<compile_context>
chip_gen: v6e
topology: v6e:2x2x1
jax: 0.10.0
libtpu: 0.0.40
codegen_flags: <defaults>
</compile_context>

<pallas_src>
import functools

import jax
import jax.numpy as jnp
from jax.experimental import pallas as pl
from jax.experimental.pallas import tpu as pltpu


def _round_up(n, m):
    return ((n + m - 1) // m) * m


def dqn_mlp_kernel(x_ref, w1_ref, b1_ref, w2_ref, b2_ref, w3_ref, b3_ref, o_ref):
    # One batch tile through the whole MLP: 3 MXU matmuls with f32 accumulate,
    # bias-add + ReLU on the VPU (free filler while the kernel is HBM-bound).
    h1 = jnp.dot(x_ref[...], w1_ref[...], preferred_element_type=jnp.float32)
    h1 = jnp.maximum(h1 + b1_ref[...], 0.0)
    h2 = jnp.dot(h1, w2_ref[...], preferred_element_type=jnp.float32)
    h2 = jnp.maximum(h2 + b2_ref[...], 0.0)
    out = jnp.dot(h2, w3_ref[...], preferred_element_type=jnp.float32) + b3_ref[...]
    o_ref[...] = out.astype(o_ref.dtype)


@functools.partial(jax.jit, static_argnames=("block_b",))
def dqn_forward(x, params, *, block_b=2048):
    w1, b1, w2, b2, w3, b3 = params
    B, D = x.shape
    H = w1.shape[1]
    O = w3.shape[1]

    # Batch tile: multiple of 8 sublanes, capped at block_b rows. When the
    # batch is large enough, force >= 2 grid steps so v7x's two TensorCores
    # both get work via the "parallel" grid axis.
    B8 = _round_up(B, 8)
    if B8 >= 16:
        TB = min(block_b, _round_up(pl.cdiv(B8, 2), 8))
    else:
        TB = B8
    B_pad = _round_up(B, TB)

    # Only row-pad the batch when needed; feature dims stay at true sizes so
    # no extra HBM round-trips are spent on padded/cast copies of x or out.
    if B_pad != B:
        x_in = jnp.zeros((B_pad, D), x.dtype).at[:B, :].set(x)
    else:
        x_in = x

    grid = (B_pad // TB,)

    flops = 2 * B_pad * (D * H + H * H + H * O)
    bytes_accessed = (
        B_pad * D * x.dtype.itemsize                       # x read
        + (D * H + H * H + H * O + 2 * H + O) * 4           # weights/biases (once)
        + B_pad * O * 4                                     # output write (true O)
    )

    const = lambda i: (0, 0)

    grid_spec = pltpu.PrefetchScalarGridSpec(
        num_scalar_prefetch=0,
        grid=grid,
        in_specs=[
            pl.BlockSpec((TB, D), lambda i: (i, 0)),   # x: streams per batch tile
            pl.BlockSpec((D, H), const),               # weights/biases: VMEM-resident
            pl.BlockSpec((1, H), const),
            pl.BlockSpec((H, H), const),
            pl.BlockSpec((1, H), const),
            pl.BlockSpec((H, O), const),
            pl.BlockSpec((1, O), const),
        ],
        out_specs=pl.BlockSpec((TB, O), lambda i: (i, 0)),  # true-O-width writeback
    )

    out = pl.pallas_call(
        dqn_mlp_kernel,
        out_shape=jax.ShapeDtypeStruct((B_pad, O), jnp.float32),
        grid_spec=grid_spec,
        compiler_params=pltpu.CompilerParams(
            dimension_semantics=("parallel",),
        ),
        cost_estimate=pl.CostEstimate(
            flops=flops, transcendentals=0, bytes_accessed=bytes_accessed
        ),
    )(x_in, w1, b1, w2, b2, w3, b3)

    if B_pad != B:
        out = out[:B]
    return out


def init_params(key, input_dim, output_dim, hidden=64):
    # Deterministic init mimicking PyTorch nn.Linear: U(-1/sqrt(fan_in), 1/sqrt(fan_in)).
    ks = jax.random.split(key, 6)

    def lin(kw, kb, fan_in, fan_out):
        bound = 1.0 / jnp.sqrt(jnp.float32(fan_in))
        w = jax.random.uniform(kw, (fan_in, fan_out), jnp.float32, -bound, bound)
        b = jax.random.uniform(kb, (1, fan_out), jnp.float32, -bound, bound)
        return w, b

    w1, b1 = lin(ks[0], ks[1], input_dim, hidden)
    w2, b2 = lin(ks[2], ks[3], hidden, hidden)
    w3, b3 = lin(ks[4], ks[5], hidden, output_dim)
    return (w1, b1, w2, b2, w3, b3)


def dqn_reference(x, params):
    w1, b1, w2, b2, w3, b3 = params
    h1 = jnp.maximum(x @ w1 + b1, 0.0)
    h2 = jnp.maximum(h1 @ w2 + b2, 0.0)
    return h2 @ w3 + b3


if __name__ == "__main__":
    key = jax.random.PRNGKey(0)
    k_x, k_p = jax.random.split(key)

    batch, input_dim, output_dim = 2, 8, 4
    x = jax.random.normal(k_x, (batch, input_dim), jnp.float32)
    params = init_params(k_p, input_dim, output_dim)

    out = dqn_forward(x, params)
    out = jax.block_until_ready(out)

    ref = dqn_reference(x, params)
    assert out.shape == (batch, output_dim)
    # f32 weights/activations; only MXU default-precision matmul differs from
    # the pure-XLA reference -> loose-but-safe tolerance.
    assert jnp.allclose(out, ref, atol=2e-2, rtol=2e-2), (out, ref)
    print("KERNEL_OK")
</pallas_src>

<mosaic_0001>
module attributes {stable_mosaic.version = 11 : i64} {
  func.func @dqn_mlp_kernel(%arg0: i32, %arg1: memref<8x8xf32, #tpu.memory_space<vmem>>, %arg2: memref<8x64xf32, #tpu.memory_space<vmem>>, %arg3: memref<1x64xf32, #tpu.memory_space<vmem>>, %arg4: memref<64x64xf32, #tpu.memory_space<vmem>>, %arg5: memref<1x64xf32, #tpu.memory_space<vmem>>, %arg6: memref<64x4xf32, #tpu.memory_space<vmem>>, %arg7: memref<1x4xf32, #tpu.memory_space<vmem>>, %arg8: memref<8x4xf32, #tpu.memory_space<vmem>>) attributes {dimension_semantics = [#tpu.dimension_semantics<parallel>], iteration_bounds = array<i64: 1>, scalar_prefetch = 0 : i64, scratch_operands = 0 : i64, tpu.core_type = #tpu.core_type<tc>, window_params = [{transform_indices = @transform_0, window_bounds = array<i64: 8, 8>}, {pipeline_mode = #tpu.pipeline_mode<synchronous>, transform_indices = @transform_1, window_bounds = array<i64: 8, 64>}, {pipeline_mode = #tpu.pipeline_mode<synchronous>, transform_indices = @transform_2, window_bounds = array<i64: 1, 64>}, {pipeline_mode = #tpu.pipeline_mode<synchronous>, transform_indices = @transform_3, window_bounds = array<i64: 64, 64>}, {pipeline_mode = #tpu.pipeline_mode<synchronous>, transform_indices = @transform_4, window_bounds = array<i64: 1, 64>}, {pipeline_mode = #tpu.pipeline_mode<synchronous>, transform_indices = @transform_5, window_bounds = array<i64: 64, 4>}, {pipeline_mode = #tpu.pipeline_mode<synchronous>, transform_indices = @transform_6, window_bounds = array<i64: 1, 4>}, {transform_indices = @transform_7, window_bounds = array<i64: 8, 4>}]} {
    %c0 = arith.constant 0 : index
    %c0_0 = arith.constant 0 : index
    %0 = vector.load %arg1[%c0, %c0_0] : memref<8x8xf32, #tpu.memory_space<vmem>>, vector<8x8xf32>
    %c0_1 = arith.constant 0 : index
    %c0_2 = arith.constant 0 : index
    %1 = vector.load %arg2[%c0_1, %c0_2] : memref<8x64xf32, #tpu.memory_space<vmem>>, vector<8x64xf32>
    %cst = arith.constant dense<0.000000e+00> : vector<8x64xf32>
    %2 = tpu.matmul %0, %1, %cst {dimension_numbers = #tpu.dot_dimension_numbers<[1], [0], [0], [1], [0, 0, 1, 1], [], []>} : vector<8x8xf32>, vector<8x64xf32>, vector<8x64xf32> -> vector<8x64xf32>
    %c0_3 = arith.constant 0 : index
    %c0_4 = arith.constant 0 : index
    %3 = vector.load %arg3[%c0_3, %c0_4] : memref<1x64xf32, #tpu.memory_space<vmem>>, vector<1x64xf32>
    %4 = vector.broadcast %3 : vector<1x64xf32> to vector<8x64xf32>
    %5 = arith.addf %2, %4 : vector<8x64xf32>
    %cst_5 = arith.constant 0.000000e+00 : f32
    %6 = vector.broadcast %cst_5 : f32 to vector<8x64xf32>
    %7 = arith.maximumf %5, %6 : vector<8x64xf32>
    %c0_6 = arith.constant 0 : index
    %c0_7 = arith.constant 0 : index
    %8 = vector.load %arg4[%c0_6, %c0_7] : memref<64x64xf32, #tpu.memory_space<vmem>>, vector<64x64xf32>
    %cst_8 = arith.constant dense<0.000000e+00> : vector<8x64xf32>
    %9 = tpu.matmul %7, %8, %cst_8 {dimension_numbers = #tpu.dot_dimension_numbers<[1], [0], [0], [1], [0, 0, 1, 1], [], []>} : vector<8x64xf32>, vector<64x64xf32>, vector<8x64xf32> -> vector<8x64xf32>
    %c0_9 = arith.constant 0 : index
    %c0_10 = arith.constant 0 : index
    %10 = vector.load %arg5[%c0_9, %c0_10] : memref<1x64xf32, #tpu.memory_space<vmem>>, vector<1x64xf32>
    %11 = vector.broadcast %10 : vector<1x64xf32> to vector<8x64xf32>
    %12 = arith.addf %9, %11 : vector<8x64xf32>
    %cst_11 = arith.constant 0.000000e+00 : f32
    %13 = vector.broadcast %cst_11 : f32 to vector<8x64xf32>
    %14 = arith.maximumf %12, %13 : vector<8x64xf32>
    %c0_12 = arith.constant 0 : index
    %c0_13 = arith.constant 0 : index
    %15 = vector.load %arg6[%c0_12, %c0_13] : memref<64x4xf32, #tpu.memory_space<vmem>>, vector<64x4xf32>
    %cst_14 = arith.constant dense<0.000000e+00> : vector<8x4xf32>
    %16 = tpu.matmul %14, %15, %cst_14 {dimension_numbers = #tpu.dot_dimension_numbers<[1], [0], [0], [1], [0, 0, 1, 1], [], []>} : vector<8x64xf32>, vector<64x4xf32>, vector<8x4xf32> -> vector<8x4xf32>
    %c0_15 = arith.constant 0 : index
    %c0_16 = arith.constant 0 : index
    %17 = vector.load %arg7[%c0_15, %c0_16] : memref<1x4xf32, #tpu.memory_space<vmem>>, vector<1x4xf32>
    %18 = vector.broadcast %17 : vector<1x4xf32> to vector<8x4xf32>
    %19 = arith.addf %16, %18 : vector<8x4xf32>
    %c0_17 = arith.constant 0 : index
    %c0_18 = arith.constant 0 : index
    %20 = vector.load %arg8[%c0_17, %c0_18] : memref<8x4xf32, #tpu.memory_space<vmem>>, vector<8x4xf32>
    tpu.vector_store %arg8[%c0_17, %c0_18], %19 {strides = array<i32>} : memref<8x4xf32, #tpu.memory_space<vmem>>, vector<8x4xf32>,
    return
  }
  func.func @transform_0(%arg0: i32) -> (i32, i32) {
    %c0_i32 = arith.constant 0 : i32
    %c0_i32_0 = arith.constant 0 : i32
    return %arg0, %c0_i32 : i32, i32
  }
  func.func @transform_1(%arg0: i32) -> (i32, i32) {
    %c0_i32 = arith.constant 0 : i32
    %c0_i32_0 = arith.constant 0 : i32
    %c0_i32_1 = arith.constant 0 : i32
    return %c0_i32, %c0_i32_0 : i32, i32
  }
  func.func @transform_2(%arg0: i32) -> (i32, i32) {
    %c0_i32 = arith.constant 0 : i32
    %c0_i32_0 = arith.constant 0 : i32
    %c0_i32_1 = arith.constant 0 : i32
    return %c0_i32, %c0_i32_0 : i32, i32
  }
  func.func @transform_3(%arg0: i32) -> (i32, i32) {
    %c0_i32 = arith.constant 0 : i32
    %c0_i32_0 = arith.constant 0 : i32
    %c0_i32_1 = arith.constant 0 : i32
    return %c0_i32, %c0_i32_0 : i32, i32
  }
  func.func @transform_4(%arg0: i32) -> (i32, i32) {
    %c0_i32 = arith.constant 0 : i32
    %c0_i32_0 = arith.constant 0 : i32
    %c0_i32_1 = arith.constant 0 : i32
    return %c0_i32, %c0_i32_0 : i32, i32
  }
  func.func @transform_5(%arg0: i32) -> (i32, i32) {
    %c0_i32 = arith.constant 0 : i32
    %c0_i32_0 = arith.constant 0 : i32
    %c0_i32_1 = arith.constant 0 : i32
    return %c0_i32, %c0_i32_0 : i32, i32
  }
  func.func @transform_6(%arg0: i32) -> (i32, i32) {
    %c0_i32 = arith.constant 0 : i32
    %c0_i32_0 = arith.constant 0 : i32
    %c0_i32_1 = arith.constant 0 : i32
    return %c0_i32, %c0_i32_0 : i32, i32
  }
  func.func @transform_7(%arg0: i32) -> (i32, i32) {
    %c0_i32 = arith.constant 0 : i32
    %c0_i32_0 = arith.constant 0 : i32
    return %arg0, %c0_i32 : i32, i32
  }
}

</mosaic_0001>

<bundles_post_ra>
// kernel: dqn_forward.1
= control target key start
LH: loop header
LB: loop body
LE: loop exit
PB: predicated region body
PF: predicated region fallthrough
CT: control target
= control target key end

     0   :  { %vm35_vm0 = vcmask 64512   ;;  %v365_v0 = vmov 0.0   ;;  %vm366_vm1 = vmmov 0   ;;  %vm125_vm2 = vcmask 523264   ;;  %s498_s1 = inlined_call_operand.vmem [shape: f32[8,64], index: 1, kind: input, shape index: {}]   ;;  %s499_s0 = inlined_call_operand.vmem [shape: f32[8,8], index: 0, kind: input, shape index: {}]   ;;  %s500_s3 = inlined_call_operand.vmem [shape: f32[64,64], index: 3, kind: input, shape index: {}]   ;;  %s501_s5 = inlined_call_operand.vmem [shape: f32[64,4], index: 5, kind: input, shape index: {}]   ;;  %s502_s2 = inlined_call_operand.vmem [shape: f32[1,64], index: 2, kind: input, shape index: {}]   ;;  %s503_s4 = inlined_call_operand.vmem [shape: f32[1,64], index: 4, kind: input, shape index: {}]   ;;  %s504_s6 = inlined_call_operand.vmem [shape: f32[1,4], index: 6, kind: input, shape index: {}]   ;;  %s505_s7 = inlined_call_operand.vmem [shape: f32[8,4], index: 7, kind: output, shape index: {}]  }
   0x1   :  { %320 = vmatprep.subr.mxu0 %v365_v0  ;;  %v27_v1 = vld [vmem:[%s498_s1] sm:$0xff]  ;;  %322 = vmatprep.mubr.msk.f32.mxu0 %vm366_vm1, %v365_v0  ;;  %v117_v3 = vld [vmem:[%s500_s3 + $0x38] sm:$0xff]  ;;  %v116_v4 = vld [vmem:[%s500_s3 + $0x30] sm:$0xff]  ;;  %vm288_vm3 = vcmask 31744  }
   0x2   :  { %v26_v2 = vld [vmem:[%s499_s0] sm:$0xff]  ;;  %321 = vmatpush3.msra.mxu0 %v27_v1  ;;  %325 = vmatprep.subr.mxu1 %v365_v0  ;;  %v115_v5 = vld [vmem:[%s500_s3 + $0x28] sm:$0xff]  ;;  %v113_v7 = vld [vmem:[%s500_s3 + $0x18] sm:$0xff] }
   0x3   :  { %323 = vmatmul.mubr.msk.f32.vlgmr.msra.gmra.mxu0 %vm35_vm0, %v26_v2  ;;  %326 = vmatpush3.msra.mxu1 %v117_v3  ;;  %v114_v6 = vld [vmem:[%s500_s3 + $0x20] sm:$0xff]  ;;  %v112_v8 = vld [vmem:[%s500_s3 + $0x10] sm:$0xff]  ;;  %v111_v9 = vld [vmem:[%s500_s3 + $0x8] sm:$0xff] }
   0x4   :  { %327 = vmatprep.subr.mxu1 %v365_v0  ;;  %341 = vmatprep.mubr.msk.f32.mxu1 %vm366_vm1, %v365_v0  ;;  %v110_v10 = vld [vmem:[%s500_s3] sm:$0xff]  ;;  %v207_v11 = vld [vmem:[%s501_s5 + $0x38] sm:$0xff]  ;;  %v206_v12 = vld [vmem:[%s501_s5 + $0x30] sm:$0xff] }
   0x5   :  { %328 = vmatpush3.msra.mxu1 %v116_v4  ;;  %344 = vmatprep.subr.mxu0 %v365_v0  ;;  %v205_v13 = vld [vmem:[%s501_s5 + $0x28] sm:$0xff]  ;;  %v204_v14 = vld [vmem:[%s501_s5 + $0x20] sm:$0xff]  ;;  %v203_v15 = vld [vmem:[%s501_s5 + $0x18] sm:$0xff] }
   0x6   :  { %329 = vmatprep.subr.mxu1 %v365_v0  ;;  %360 = vmatprep.mubr.msk.f32.mxu0 %vm366_vm1, %v365_v0  ;;  %v294_v16 = vld [vmem:[%s502_s2] ss:$0 sm:$0xff]  ;;  %v202_v21 = vld [vmem:[%s501_s5 + $0x10] sm:$0xff]  ;;  %v201_v22 = vld [vmem:[%s501_s5 + $0x8] sm:$0xff] }
   0x7   :  { %330 = vmatpush3.msra.mxu1 %v115_v5  ;;  %345 = vmatpush3.msra.mxu0 %v207_v11  ;;  %v200_v23 = vld [vmem:[%s501_s5] sm:$0xff] }
   0x8   :  { %331 = vmatprep.subr.mxu1 %v365_v0  ;;  %346 = vmatprep.subr.mxu0 %v365_v0  ;;  %v296_v24 = vld [vmem:[%s503_s4] ss:$0 sm:$0xff] }
   0x9   :  { %332 = vmatpush3.msra.mxu1 %v114_v6  ;;  %347 = vmatpush3.msra.mxu0 %v206_v12  ;;  %v298_v29 = vld [vmem:[%s504_s6] ss:$0 sm:$0xff] }
   0xa   :  { %333 = vmatprep.subr.mxu1 %v365_v0  ;;  %348 = vmatprep.subr.mxu0 %v365_v0 }
   0xb   :  { %334 = vmatpush3.msra.mxu1 %v113_v7  ;;  %349 = vmatpush3.msra.mxu0 %v205_v13 }
   0xc   :  { %335 = vmatprep.subr.mxu1 %v365_v0  ;;  %350 = vmatprep.subr.mxu0 %v365_v0 }
   0xd   :  { %336 = vmatpush3.msra.mxu1 %v112_v8  ;;  %351 = vmatpush3.msra.mxu0 %v204_v14 }
   0xe   :  { %337 = vmatprep.subr.mxu1 %v365_v0  ;;  %352 = vmatprep.subr.mxu0 %v365_v0 }
   0xf   :  { %338 = vmatpush3.msra.mxu1 %v111_v9  ;;  %353 = vmatpush3.msra.mxu0 %v203_v15 }
  0x10   :  { %339 = vmatprep.subr.mxu1 %v365_v0  ;;  %354 = vmatprep.subr.mxu0 %v365_v0 }
  0x11   :  { %340 = vmatpush3.msra.mxu1 %v110_v10  ;;  %355 = vmatpush3.msra.mxu0 %v202_v21 }
  0x12   :  { %356 = vmatprep.subr.mxu0 %v365_v0 }
  0x13   :  { %357 = vmatpush3.msra.mxu0 %v201_v22 }
  0x14   :  { %358 = vmatprep.subr.mxu0 %v365_v0 }
  0x15   :  { %359 = vmatpush3.msra.mxu0 %v200_v23 }
  0xc3   :  { %v105_v17 = vpop.f32.mrf.mxu0 }
  0xc4   :  { %v106_v18 = vadd.f32 %v294_v16, %v105_v17 }
  0xc5   :  { %v324_v19 = vpop.f32.mrf.mxu0 }
  0xc6   :  { %v109_v20 = vmax.f32 %v106_v18, 0.0 }
  0xc8   :  { %342 = vmatmul.mubr.msk.f32.vlgmr.msra.gmra.mxu1 %vm125_vm2, %v109_v20 }
 0x188   :  { %v195_v25 = vpop.f32.mrf.mxu1 }
 0x189   :  { %v196_v26 = vadd.f32 %v296_v24, %v195_v25 }
 0x18a   :  { %v343_v27 = vpop.f32.mrf.mxu1 }
 0x18b   :  { %v199_v28 = vmax.f32 %v196_v26, 0.0 }
 0x18d   :  { %361 = vmatmul.mubr.msk.f32.vlgmr.msra.gmra.mxu0 %vm125_vm2, %v199_v28 }
 0x24d   :  { %v284_v30 = vpop.f32.mrf.mxu0 }
 0x24e   :  { %v285_v31 = vadd.f32 %v298_v29, %v284_v30 }
 0x24f   :  { %v362_v32 = vpop.f32.mrf.mxu0 }
 0x250   :  { %289 = vst.msk [vmem:[%s505_s7] sm:$0xff] %vm288_vm3, %v285_v31 }

</bundles_post_ra>
